<compile_context>
chip_gen: v6e
topology: v6e:2x2x1
jax: 0.10.0
libtpu: 0.0.40
codegen_flags: <defaults>
</compile_context>

<pallas_src>
import math

import jax
import jax.numpy as jnp
from jax.experimental import pallas as pl
from jax.experimental.pallas import tpu as pltpu


def _leaky_relu(x, slope=0.01):
    # For slope in (0,1): leaky_relu(x) == max(x, slope*x); cheaper than where(cmp, ...).
    return jnp.maximum(x, slope * x)


def _mlp_kernel(x_ref,
                w1_ref, b1_ref,
                w2_ref, b2_ref,
                w3_ref, b3_ref,
                w4_ref, b4_ref,
                o_ref):
    # Fused hot path: 4 MXU matmuls (bf16 operands, f32 accumulation) + 3 f32 leaky-relus.
    x = x_ref[...].astype(jnp.bfloat16)                                  # f32->bf16 fused

    h = jnp.dot(x, w1_ref[...], preferred_element_type=jnp.float32) + b1_ref[...]
    h = _leaky_relu(h)

    h = jnp.dot(h.astype(jnp.bfloat16), w2_ref[...],
                preferred_element_type=jnp.float32) + b2_ref[...]
    h = _leaky_relu(h)

    h = jnp.dot(h.astype(jnp.bfloat16), w3_ref[...],
                preferred_element_type=jnp.float32) + b3_ref[...]
    h = _leaky_relu(h)

    h = jnp.dot(h.astype(jnp.bfloat16), w4_ref[...],
                preferred_element_type=jnp.float32) + b4_ref[...]
    o_ref[...] = h.astype(o_ref.dtype)                                   # (tm, out_f) store


def _round_up(x, m):
    return ((x + m - 1) // m) * m


def _choose_tile_m(n, tile_max=2048, align=16):
    """Pick tile_m so the grid has an even number of >= 4 steps when n allows
    (>= 2 steps per TensorCore on v7x, balanced), capped at tile_max, aligned to 16."""
    if n <= align:
        return align
    # smallest even step count >= 4 such that tile_m <= tile_max
    steps = max(4, 2 * pl.cdiv(pl.cdiv(n, tile_max), 2))
    tm = _round_up(pl.cdiv(n, steps), align)
    return min(tm, tile_max)


def recognition_decoder(embedding, params, *, tile_m=None,
                        out_dtype=jnp.float32, min_rows_for_pallas=256):
    """Forward pass. embedding: float (..., in_f). params: dict from init_params()
    with weights in (in, out) layout. Returns (..., out_f) in `out_dtype`."""
    in_f = embedding.shape[-1]
    lead = embedding.shape[:-1]
    n = math.prod(lead) if lead else 1
    out_f = params["w4"].shape[1]

    x2d = embedding.reshape(n, in_f).astype(jnp.float32)

    # Tiny-batch fallback: a plain fused XLA dot chain beats pallas_call launch +
    # pipeline overhead when there is ~<1 us of math.
    if tile_m is None and n < min_rows_for_pallas:
        return _reference_f32(x2d, params).astype(out_dtype).reshape(*lead, out_f)

    if tile_m is None:
        tile_m = _choose_tile_m(n)
    grid = pl.cdiv(n, tile_m)   # ragged last block: OOB writes discarded by Pallas

    # --- host-side prep (tiny arrays only): bf16 weights, f32 biases ---
    w1 = params["w1"].astype(jnp.bfloat16)
    w2 = params["w2"].astype(jnp.bfloat16)
    w3 = params["w3"].astype(jnp.bfloat16)
    w4 = params["w4"].astype(jnp.bfloat16)
    b1 = params["b1"].astype(jnp.float32)
    b2 = params["b2"].astype(jnp.float32)
    b3 = params["b3"].astype(jnp.float32)
    b4 = params["b4"].astype(jnp.float32)

    d1, d2 = w1.shape[1], w2.shape[1]
    mm_terms = in_f * d1 + d1 * d2 + d2 * d2 + d2 * out_f
    cost = pl.CostEstimate(
        flops=2 * n * mm_terms,
        transcendentals=0,
        bytes_accessed=(x2d.size * 4
                        + n * out_f * jnp.dtype(out_dtype).itemsize
                        + (w1.size + w2.size + w3.size + w4.size) * 2
                        + (b1.size + b2.size + b3.size + b4.size) * 4),
    )

    def full_spec(arr):
        # Whole (small) weight/bias resident in VMEM at every grid step; grid-invariant
        # index_map so Mosaic does not need to re-fetch it per step.
        return pl.BlockSpec(arr.shape, lambda i: (0, 0))

    grid_spec = pltpu.PrefetchScalarGridSpec(
        num_scalar_prefetch=0,
        grid=(grid,),
        in_specs=[
            pl.BlockSpec((tile_m, in_f), lambda i: (i, 0)),
            full_spec(w1), full_spec(b1),
            full_spec(w2), full_spec(b2),
            full_spec(w3), full_spec(b3),
            full_spec(w4), full_spec(b4),
        ],
        out_specs=pl.BlockSpec((tile_m, out_f), lambda i: (i, 0)),
    )

    out2d = pl.pallas_call(
        _mlp_kernel,
        out_shape=jax.ShapeDtypeStruct((n, out_f), out_dtype),
        grid_spec=grid_spec,
        compiler_params=pltpu.CompilerParams(
            dimension_semantics=("parallel",)),
        cost_estimate=cost,
    )(x2d, w1, b1, w2, b2, w3, b3, w4, b4)

    return out2d.reshape(*lead, out_f)


# ------------------------- parameter init (matches PyTorch) -------------------------

def _xavier_uniform(key, fan_in, fan_out):
    # matches nn.init.xavier_uniform_ on a (fan_out, fan_in) weight;
    # returned already transposed to (fan_in, fan_out) so the kernel does x @ W.
    bound = math.sqrt(6.0 / (fan_in + fan_out))
    w = jax.random.uniform(key, (fan_out, fan_in), jnp.float32, -bound, bound)
    return w.T


def init_params(key, in_f, out_f):
    k1, k2, k3, k4 = jax.random.split(key, 4)
    d1, d2 = in_f * 2, in_f * 4
    return {
        "w1": _xavier_uniform(k1, in_f, d1), "b1": jnp.zeros((1, d1), jnp.float32),
        "w2": _xavier_uniform(k2, d1, d2),   "b2": jnp.zeros((1, d2), jnp.float32),
        "w3": _xavier_uniform(k3, d2, d2),   "b3": jnp.zeros((1, d2), jnp.float32),
        "w4": _xavier_uniform(k4, d2, out_f), "b4": jnp.zeros((1, out_f), jnp.float32),
    }


# ------------------------------ references for testing ------------------------------

def _reference_f32(x, p):
    h = _leaky_relu(x @ p["w1"] + p["b1"])
    h = _leaky_relu(h @ p["w2"] + p["b2"])
    h = _leaky_relu(h @ p["w3"] + p["b3"])
    return h @ p["w4"] + p["b4"]


def _reference_bf16(x, p):
    # mirrors the kernel's numerics: bf16 matmul operands, f32 accumulation/activation
    def d(a, w):
        return jnp.dot(a.astype(jnp.bfloat16).astype(jnp.float32),
                       w.astype(jnp.bfloat16).astype(jnp.float32),
                       preferred_element_type=jnp.float32)
    h = _leaky_relu(d(x, p["w1"]) + p["b1"])
    h = _leaky_relu(d(h, p["w2"]) + p["b2"])
    h = _leaky_relu(d(h, p["w3"]) + p["b3"])
    return d(h, p["w4"]) + p["b4"]


if __name__ == "__main__":
    # config.single_embbeding_size = 32, config.recognition_num_classes = 16
    in_f, out_f = 32, 16

    key = jax.random.PRNGKey(0)
    k_emb, k_par, k_big = jax.random.split(key, 3)
    params = init_params(k_par, in_f, out_f)

    # --- small test shape (batch=2, seq=8): force the Pallas path (disable fallback) ---
    batch, seq = 2, 8
    embedding = jax.random.normal(k_emb, (batch, seq, in_f), jnp.float32)
    out = recognition_decoder(embedding, params, min_rows_for_pallas=0)
    out = jax.block_until_ready(out)
    assert out.shape == (batch, seq, out_f)

    x2d = embedding.reshape(batch * seq, in_f)
    ref_bf16 = _reference_bf16(x2d, params).reshape(batch, seq, out_f)
    ref_f32 = _reference_f32(x2d, params).reshape(batch, seq, out_f)
    # tight check vs bf16-emulated reference (same precision choice as the kernel)
    assert jnp.allclose(out, ref_bf16, atol=1e-2, rtol=1e-2), "mismatch vs bf16 reference"
    # loose check vs full-f32 reference (bf16 matmul is a deliberate precision trade)
    assert jnp.allclose(out, ref_f32, atol=1e-1, rtol=1e-1), "mismatch vs f32 reference"

    # --- larger ragged shape: exercises multi-step grid + ragged last block (no pad) ---
    batch2, seq2 = 3, 347                             # n = 1041, not a multiple of tile_m
    emb_big = jax.random.normal(k_big, (batch2, seq2, in_f), jnp.float32)
    out_big = jax.block_until_ready(recognition_decoder(emb_big, params))
    assert out_big.shape == (batch2, seq2, out_f)
    ref_big = _reference_bf16(emb_big.reshape(-1, in_f), params).reshape(batch2, seq2, out_f)
    assert jnp.allclose(out_big, ref_big, atol=1e-2, rtol=1e-2), "ragged-grid mismatch"

    print("KERNEL_OK")
</pallas_src>

<mosaic_0001>
module attributes {stable_mosaic.version = 11 : i64} {
  func.func @_mlp_kernel(%arg0: i32, %arg1: memref<16x32xf32, #tpu.memory_space<vmem>>, %arg2: memref<32x64xbf16, #tpu.memory_space<vmem>>, %arg3: memref<1x64xf32, #tpu.memory_space<vmem>>, %arg4: memref<64x128xbf16, #tpu.memory_space<vmem>>, %arg5: memref<1x128xf32, #tpu.memory_space<vmem>>, %arg6: memref<128x128xbf16, #tpu.memory_space<vmem>>, %arg7: memref<1x128xf32, #tpu.memory_space<vmem>>, %arg8: memref<128x16xbf16, #tpu.memory_space<vmem>>, %arg9: memref<1x16xf32, #tpu.memory_space<vmem>>, %arg10: memref<16x16xf32, #tpu.memory_space<vmem>>) attributes {dimension_semantics = [#tpu.dimension_semantics<parallel>], iteration_bounds = array<i64: 1>, scalar_prefetch = 0 : i64, scratch_operands = 0 : i64, tpu.core_type = #tpu.core_type<tc>, window_params = [{transform_indices = @transform_0, window_bounds = array<i64: 16, 32>}, {pipeline_mode = #tpu.pipeline_mode<synchronous>, transform_indices = @transform_1, window_bounds = array<i64: 32, 64>}, {pipeline_mode = #tpu.pipeline_mode<synchronous>, transform_indices = @transform_2, window_bounds = array<i64: 1, 64>}, {pipeline_mode = #tpu.pipeline_mode<synchronous>, transform_indices = @transform_3, window_bounds = array<i64: 64, 128>}, {pipeline_mode = #tpu.pipeline_mode<synchronous>, transform_indices = @transform_4, window_bounds = array<i64: 1, 128>}, {pipeline_mode = #tpu.pipeline_mode<synchronous>, transform_indices = @transform_5, window_bounds = array<i64: 128, 128>}, {pipeline_mode = #tpu.pipeline_mode<synchronous>, transform_indices = @transform_6, window_bounds = array<i64: 1, 128>}, {pipeline_mode = #tpu.pipeline_mode<synchronous>, transform_indices = @transform_7, window_bounds = array<i64: 128, 16>}, {pipeline_mode = #tpu.pipeline_mode<synchronous>, transform_indices = @transform_8, window_bounds = array<i64: 1, 16>}, {transform_indices = @transform_9, window_bounds = array<i64: 16, 16>}]} {
    %c0 = arith.constant 0 : index
    %c0_0 = arith.constant 0 : index
    %0 = vector.load %arg1[%c0, %c0_0] : memref<16x32xf32, #tpu.memory_space<vmem>>, vector<16x32xf32>
    %1 = arith.truncf %0 : vector<16x32xf32> to vector<16x32xbf16>
    %c0_1 = arith.constant 0 : index
    %c0_2 = arith.constant 0 : index
    %2 = vector.load %arg2[%c0_1, %c0_2] : memref<32x64xbf16, #tpu.memory_space<vmem>>, vector<32x64xbf16>
    %cst = arith.constant dense<0.000000e+00> : vector<16x64xf32>
    %3 = tpu.matmul %1, %2, %cst {dimension_numbers = #tpu.dot_dimension_numbers<[1], [0], [0], [1], [0, 0, 1, 1], [], []>} : vector<16x32xbf16>, vector<32x64xbf16>, vector<16x64xf32> -> vector<16x64xf32>
    %c0_3 = arith.constant 0 : index
    %c0_4 = arith.constant 0 : index
    %4 = vector.load %arg3[%c0_3, %c0_4] : memref<1x64xf32, #tpu.memory_space<vmem>>, vector<1x64xf32>
    %5 = vector.broadcast %4 : vector<1x64xf32> to vector<16x64xf32>
    %6 = arith.addf %3, %5 : vector<16x64xf32>
    %cst_5 = arith.constant 0.00999999977 : f32
    %7 = vector.broadcast %cst_5 : f32 to vector<16x64xf32>
    %8 = arith.mulf %7, %6 : vector<16x64xf32>
    %9 = arith.maximumf %6, %8 : vector<16x64xf32>
    %10 = arith.truncf %9 : vector<16x64xf32> to vector<16x64xbf16>
    %c0_6 = arith.constant 0 : index
    %c0_7 = arith.constant 0 : index
    %11 = vector.load %arg4[%c0_6, %c0_7] : memref<64x128xbf16, #tpu.memory_space<vmem>>, vector<64x128xbf16>
    %cst_8 = arith.constant dense<0.000000e+00> : vector<16x128xf32>
    %12 = tpu.matmul %10, %11, %cst_8 {dimension_numbers = #tpu.dot_dimension_numbers<[1], [0], [0], [1], [0, 0, 1, 1], [], []>} : vector<16x64xbf16>, vector<64x128xbf16>, vector<16x128xf32> -> vector<16x128xf32>
    %c0_9 = arith.constant 0 : index
    %c0_10 = arith.constant 0 : index
    %13 = vector.load %arg5[%c0_9, %c0_10] : memref<1x128xf32, #tpu.memory_space<vmem>>, vector<1x128xf32>
    %14 = vector.broadcast %13 : vector<1x128xf32> to vector<16x128xf32>
    %15 = arith.addf %12, %14 : vector<16x128xf32>
    %cst_11 = arith.constant 0.00999999977 : f32
    %16 = vector.broadcast %cst_11 : f32 to vector<16x128xf32>
    %17 = arith.mulf %16, %15 : vector<16x128xf32>
    %18 = arith.maximumf %15, %17 : vector<16x128xf32>
    %19 = arith.truncf %18 : vector<16x128xf32> to vector<16x128xbf16>
    %c0_12 = arith.constant 0 : index
    %c0_13 = arith.constant 0 : index
    %20 = vector.load %arg6[%c0_12, %c0_13] : memref<128x128xbf16, #tpu.memory_space<vmem>>, vector<128x128xbf16>
    %cst_14 = arith.constant dense<0.000000e+00> : vector<16x128xf32>
    %21 = tpu.matmul %19, %20, %cst_14 {dimension_numbers = #tpu.dot_dimension_numbers<[1], [0], [0], [1], [0, 0, 1, 1], [], []>} : vector<16x128xbf16>, vector<128x128xbf16>, vector<16x128xf32> -> vector<16x128xf32>
    %c0_15 = arith.constant 0 : index
    %c0_16 = arith.constant 0 : index
    %22 = vector.load %arg7[%c0_15, %c0_16] : memref<1x128xf32, #tpu.memory_space<vmem>>, vector<1x128xf32>
    %23 = vector.broadcast %22 : vector<1x128xf32> to vector<16x128xf32>
    %24 = arith.addf %21, %23 : vector<16x128xf32>
    %cst_17 = arith.constant 0.00999999977 : f32
    %25 = vector.broadcast %cst_17 : f32 to vector<16x128xf32>
    %26 = arith.mulf %25, %24 : vector<16x128xf32>
    %27 = arith.maximumf %24, %26 : vector<16x128xf32>
    %28 = arith.truncf %27 : vector<16x128xf32> to vector<16x128xbf16>
    %c0_18 = arith.constant 0 : index
    %c0_19 = arith.constant 0 : index
    %29 = vector.load %arg8[%c0_18, %c0_19] : memref<128x16xbf16, #tpu.memory_space<vmem>>, vector<128x16xbf16>
    %cst_20 = arith.constant dense<0.000000e+00> : vector<16x16xf32>
    %30 = tpu.matmul %28, %29, %cst_20 {dimension_numbers = #tpu.dot_dimension_numbers<[1], [0], [0], [1], [0, 0, 1, 1], [], []>} : vector<16x128xbf16>, vector<128x16xbf16>, vector<16x16xf32> -> vector<16x16xf32>
    %c0_21 = arith.constant 0 : index
    %c0_22 = arith.constant 0 : index
    %31 = vector.load %arg9[%c0_21, %c0_22] : memref<1x16xf32, #tpu.memory_space<vmem>>, vector<1x16xf32>
    %32 = vector.broadcast %31 : vector<1x16xf32> to vector<16x16xf32>
    %33 = arith.addf %30, %32 : vector<16x16xf32>
    %c0_23 = arith.constant 0 : index
    %c0_24 = arith.constant 0 : index
    %34 = vector.load %arg10[%c0_23, %c0_24] : memref<16x16xf32, #tpu.memory_space<vmem>>, vector<16x16xf32>
    tpu.vector_store %arg10[%c0_23, %c0_24], %33 {strides = array<i32>} : memref<16x16xf32, #tpu.memory_space<vmem>>, vector<16x16xf32>,
    return
  }
  func.func @transform_0(%arg0: i32) -> (i32, i32) {
    %c0_i32 = arith.constant 0 : i32
    %c0_i32_0 = arith.constant 0 : i32
    return %arg0, %c0_i32 : i32, i32
  }
  func.func @transform_1(%arg0: i32) -> (i32, i32) {
    %c0_i32 = arith.constant 0 : i32
    %c0_i32_0 = arith.constant 0 : i32
    %c0_i32_1 = arith.constant 0 : i32
    return %c0_i32, %c0_i32_0 : i32, i32
  }
  func.func @transform_2(%arg0: i32) -> (i32, i32) {
    %c0_i32 = arith.constant 0 : i32
    %c0_i32_0 = arith.constant 0 : i32
    %c0_i32_1 = arith.constant 0 : i32
    return %c0_i32, %c0_i32_0 : i32, i32
  }
  func.func @transform_3(%arg0: i32) -> (i32, i32) {
    %c0_i32 = arith.constant 0 : i32
    %c0_i32_0 = arith.constant 0 : i32
    %c0_i32_1 = arith.constant 0 : i32
    return %c0_i32, %c0_i32_0 : i32, i32
  }
  func.func @transform_4(%arg0: i32) -> (i32, i32) {
    %c0_i32 = arith.constant 0 : i32
    %c0_i32_0 = arith.constant 0 : i32
    %c0_i32_1 = arith.constant 0 : i32
    return %c0_i32, %c0_i32_0 : i32, i32
  }
  func.func @transform_5(%arg0: i32) -> (i32, i32) {
    %c0_i32 = arith.constant 0 : i32
    %c0_i32_0 = arith.constant 0 : i32
    %c0_i32_1 = arith.constant 0 : i32
    return %c0_i32, %c0_i32_0 : i32, i32
  }
  func.func @transform_6(%arg0: i32) -> (i32, i32) {
    %c0_i32 = arith.constant 0 : i32
    %c0_i32_0 = arith.constant 0 : i32
    %c0_i32_1 = arith.constant 0 : i32
    return %c0_i32, %c0_i32_0 : i32, i32
  }
  func.func @transform_7(%arg0: i32) -> (i32, i32) {
    %c0_i32 = arith.constant 0 : i32
    %c0_i32_0 = arith.constant 0 : i32
    %c0_i32_1 = arith.constant 0 : i32
    return %c0_i32, %c0_i32_0 : i32, i32
  }
  func.func @transform_8(%arg0: i32) -> (i32, i32) {
    %c0_i32 = arith.constant 0 : i32
    %c0_i32_0 = arith.constant 0 : i32
    %c0_i32_1 = arith.constant 0 : i32
    return %c0_i32, %c0_i32_0 : i32, i32
  }
  func.func @transform_9(%arg0: i32) -> (i32, i32) {
    %c0_i32 = arith.constant 0 : i32
    %c0_i32_0 = arith.constant 0 : i32
    return %arg0, %c0_i32 : i32, i32
  }
}

</mosaic_0001>

<bundles_post_ra>
// kernel: tpu_custom_call.1
= control target key start
LH: loop header
LB: loop body
LE: loop exit
PB: predicated region body
PF: predicated region fallthrough
CT: control target
= control target key end

     0   :  { %14 = vsyncpa [#allocation3], 0  ;;  %s885_s0 = inlined_call_operand.vmem [shape: f32[16,32], index: 0, kind: input, shape index: {}]   ;;  %s886_s1 = inlined_call_operand.hbm [shape: bf16[32,64], index: 1, kind: input, shape index: {}]   ;;  %s887_s2 = inlined_call_operand.vmem [shape: f32[1,64], index: 2, kind: input, shape index: {}]   ;;  %s888_s3 = inlined_call_operand.hbm [shape: bf16[64,128], index: 3, kind: input, shape index: {}]   ;;  %s889_s4 = inlined_call_operand.hbm [shape: f32[1,128], index: 4, kind: input, shape index: {}]   ;;  %s890_s5 = inlined_call_operand.vmem [shape: bf16[128,128], index: 5, kind: input, shape index: {}]   ;;  %s891_s6 = inlined_call_operand.vmem [shape: f32[1,128], index: 6, kind: input, shape index: {}]   ;;  %s892_s7 = inlined_call_operand.vmem [shape: bf16[128,16], index: 7, kind: input, shape index: {}]   ;;  %s893_s8 = inlined_call_operand.vmem [shape: f32[1,16], index: 8, kind: input, shape index: {}]   ;;  %s894_s9 = inlined_call_operand.hbm [shape: f32[16,16], index: 9, kind: output, shape index: {}]  }
   0x1   :  { %15 = vsyncpa [#allocation6], 0 }
   0x2   :  { %16 = vsyncpa [#allocation4], 0  ;;  %s720_s30 = smov [#allocation5]   ;;  %s721_s11 = smov [#allocation2]  }
   0x3   :  { %s38_s10 = sshll.u32 %s720_s30, 4  ;;  %s24_s12 = sshll.u32 %s721_s11, 4  ;;  %s39_s10 = int_to_ptr.vmem [resolvable:$true] %s38_s10  ;;  %s25_s12 = int_to_ptr.vmem [resolvable:$true] %s24_s12 }
   0x4   :  { %s642_s13 = scalar_lea.vmem %s39_s10, 512  ;;  %p647_p1 = scmp.lt.s32.totalorder %s39_s10, %s39_s10 }
   0x5   :  { %p643_p0 = scmp.ne.s32.totalorder %s39_s10, %s642_s13  ;;  %p648_p2 = scmp.lt.s32.totalorder %s642_s13, %s642_s13 }
   0x7   :  { %p649_p3 = por %p648_p2, %p647_p1 }
   0x9   :  { %p650_p4 = pnand %p649_p3, %p643_p0 }
   0xb   :  { %653 = shalt.err (!%p650_p4)
}
   0xc   :  { %s722_s14 = smov 64   ;;  %s723_s15 = smov 4  }
   0xd   :  { %44 = dma.hbm_to_vmem [thread:$0]  %s888_s3, 512, %s39_s10, [#allocation6], %s722_s14, %s722_s14, %s723_s15  }
   0xe   :  { %s662_s18 = scalar_lea.vmem %s25_s12, 256  ;;  %p667_p6 = scmp.lt.s32.totalorder %s25_s12, %s25_s12 }
   0xf   :  { %p663_p5 = scmp.ne.s32.totalorder %s25_s12, %s662_s18  ;;  %p668_p7 = scmp.lt.s32.totalorder %s662_s18, %s662_s18 }
  0x11   :  { %p669_p8 = por %p668_p7, %p667_p6 }
  0x13   :  { %p670_p9 = pnand %p669_p8, %p663_p5 }
  0x15   :  { %673 = shalt.err (!%p670_p9)
}
  0x16   :  { %30 = dma.hbm_to_vmem [thread:$0]  %s886_s1, 256, %s25_s12, [#allocation3], %s722_s14, %s722_s14, %s723_s15  }
  0x17   :  { %s724_s21 = smov [#allocation7]  }
  0x18   :  { %s51_s22 = sshll.u32 %s724_s21, 4  ;;  %s52_s22 = int_to_ptr.vmem [resolvable:$true] %s51_s22 }
  0x19   :  { %s682_s23 = scalar_lea.vmem %s52_s22, 16  ;;  %s686_s24 = scalar_lea.vmem %s52_s22, 32 }
  0x1a   :  { %p683_p10 = scmp.ne.s32.totalorder %s52_s22, %s682_s23  ;;  %p687_p11 = scmp.lt.s32.totalorder %s52_s22, %s52_s22 }
  0x1b   :  { %p688_p12 = scmp.lt.s32.totalorder %s686_s24, %s682_s23 }
  0x1d   :  { %p689_p13 = por %p688_p12, %p687_p11 }
  0x1f   :  { %p690_p0 = pnand %p689_p13, %p683_p10 }
  0x21   :  { %693 = shalt.err (!%p690_p0)
}
  0x22   :  { %54 = dma.hbm_to_vmem [thread:$0]  %s889_s4, 16, %s52_s22, [#allocation6]  }
  0x23   :  { %714 = dma.done.wait [#allocation3], 256  }
  0x24   :  { %715 = vsyncadd [#allocation3], 4294967040 }
  0x25   :  { %716 = dma.done.wait [#allocation6], 528  }
  0x26   :  { %717 = vsyncadd [#allocation6], 4294966768  ;;  %v725_v0 = vmov 0.0   ;;  %vm726_vm0 = vmmov 0   ;;  %v612_v1 = vld [vmem:[#allocation2 + $0x8] sm:$0xff]   ;;  %v613_v2 = vld [vmem:[#allocation2] sm:$0xff]  }
  0x27   :  { %542 = vmatprep.subr.bf16.mxu0 %v725_v0  ;;  %546 = vmatprep.mubr.msk.bf16.mxu0 %vm726_vm0, %v725_v0  ;;  %v73_v3 = vld [vmem:[%s885_s0] sm:$0xff]  ;;  %v74_v4 = vld [vmem:[%s885_s0 + $0x8] sm:$0xff]  ;;  %vm99_vm1 = vcmask 261120   ;;  %v616_v8 = vld [vmem:[#allocation5 + $0x8] sm:$0xff]   ;;  %vm188_vm2 = vcmask 523264   ;;  %vm467_vm3 = vcmask 130048  }
  0x28   :  { %550 = vmatprep.subr.bf16.mxu1 %v725_v0  ;;  %558 = vmatprep.mubr.msk.bf16.mxu1 %vm726_vm0, %v725_v0  ;;  %v614_v5 = vld [vmem:[#allocation5 + $0x18] sm:$0xff]   ;;  %v75_v6 = vpack.c.bf16 %v74_v4, %v73_v3  ;;  %v615_v7 = vld [vmem:[#allocation5 + $0x10] sm:$0xff]   ;;  %v617_v9 = vld [vmem:[#allocation5] sm:$0xff]  }
  0x29   :  { %543 = vmatpush3.bf16.msra.mxu0 %v612_v1  ;;  %551 = vmatpush3.bf16.msra.mxu1 %v614_v5  ;;  %v618_v10 = vld [vmem:[%s890_s5 + $0x38] sm:$0xff]   ;;  %v619_v11 = vld [vmem:[%s890_s5 + $0x30] sm:$0xff]   ;;  %v620_v12 = vld [vmem:[%s890_s5 + $0x28] sm:$0xff]  }
  0x2a   :  { %544 = vmatprep.subr.bf16.mxu0 %v725_v0  ;;  %552 = vmatprep.subr.bf16.mxu1 %v725_v0  ;;  %v621_v13 = vld [vmem:[%s890_s5 + $0x20] sm:$0xff]   ;;  %v622_v14 = vld [vmem:[%s890_s5 + $0x18] sm:$0xff]   ;;  %v623_v27 = vld [vmem:[%s890_s5 + $0x10] sm:$0xff]  }
  0x2b   :  { %v488_v15 = vld [vmem:[%s887_s2] ss:$0 sm:$0xff]  ;;  %v624_v28 = vld [vmem:[%s890_s5 + $0x8] sm:$0xff]   ;;  %v626_v30 = vld [vmem:[%s892_s7 + $0x38] sm:$0xff]  }
  0x2c   :  { %v625_v29 = vld [vmem:[%s890_s5] sm:$0xff]   ;;  %v627_v31 = vld [vmem:[%s892_s7 + $0x30] sm:$0xff]   ;;  %v628_v32 = vld [vmem:[%s892_s7 + $0x28] sm:$0xff]  }
  0x2d   :  { %545 = vmatpush3.bf16.msra.mxu0 %v613_v2  ;;  %553 = vmatpush3.bf16.msra.mxu1 %v615_v7  ;;  %v629_v33 = vld [vmem:[%s892_s7 + $0x20] sm:$0xff]   ;;  %v630_v34 = vld [vmem:[%s892_s7 + $0x18] sm:$0xff]   ;;  %v492_v35 = vld [vmem:[#allocation7] ss:$0 sm:$0xff] }
  0x2e   :  { %562 = vmatprep.subr.bf16.mxu0 %v725_v0  ;;  %554 = vmatprep.subr.bf16.mxu1 %v725_v0  ;;  %v631_v47 = vld [vmem:[%s892_s7 + $0x10] sm:$0xff]   ;;  %v632_v48 = vld [vmem:[%s892_s7 + $0x8] sm:$0xff]   ;;  %v633_v49 = vld [vmem:[%s892_s7] sm:$0xff]  }
  0x2f   :  { %v498_v50 = vld [vmem:[%s891_s6] ss:$0 sm:$0xff]  ;;  %s727_s6 = smov [#allocation8]  }
  0x30   :  { %547 = vmatmul.mubr.msk.bf16.vlgmr.msra.gmra.mxu0 %vm99_vm1, %v75_v6  ;;  %v507_v62 = vld [vmem:[%s893_s8] ss:$0 sm:$0xff]  ;;  %s475_s7 = sshll.u32 %s727_s6, 4  ;;  %s476_s7 = int_to_ptr.vmem [resolvable:$true] %s475_s7 }
  0x31   :  { %578 = vmatprep.mubr.msk.bf16.mxu0 %vm726_vm0, %v725_v0  ;;  %555 = vmatpush3.bf16.msra.mxu1 %v616_v8  ;;  %s694_s17 = scalar_lea.vmem %s476_s7, 256  ;;  %p699_p2 = scmp.lt.s32.totalorder %s476_s7, %s476_s7 }
  0x32   :  { %556 = vmatprep.subr.bf16.mxu1 %v725_v0  ;;  %563 = vmatpush3.bf16.msra.mxu0 %v618_v10  ;;  %p695_p1 = scmp.ne.s32.totalorder %s476_s7, %s694_s17  ;;  %p700_p3 = scmp.lt.s32.totalorder %s694_s17, %s694_s17 }
  0x33   :  { %564 = vmatprep.subr.bf16.mxu0 %v725_v0 }
  0x34   :  { %p701_p4 = por %p700_p3, %p699_p2 }
  0x35   :  { %557 = vmatpush3.bf16.msra.mxu1 %v617_v9 }
  0x36   :  { %582 = vmatprep.subr.bf16.mxu1 %v725_v0  ;;  %565 = vmatpush3.bf16.msra.mxu0 %v619_v11  ;;  %p702_p5 = pnand %p701_p4, %p695_p1 }
  0x37   :  { %566 = vmatprep.subr.bf16.mxu0 %v725_v0 }
  0x3a   :  { %567 = vmatpush3.bf16.msra.mxu0 %v620_v12 }
  0x3b   :  { %568 = vmatprep.subr.bf16.mxu0 %v725_v0 }
  0x3e   :  { %569 = vmatpush3.bf16.msra.mxu0 %v621_v13 }
  0x3f   :  { %570 = vmatprep.subr.bf16.mxu0 %v725_v0 }
  0x42   :  { %571 = vmatpush3.bf16.msra.mxu0 %v622_v14 }
  0x43   :  { %572 = vmatprep.subr.bf16.mxu0 %v725_v0 }
  0x46   :  { %573 = vmatpush3.bf16.msra.mxu0 %v623_v27 }
  0x47   :  { %574 = vmatprep.subr.bf16.mxu0 %v725_v0 }
  0x4a   :  { %575 = vmatpush3.bf16.msra.mxu0 %v624_v28 }
  0x4b   :  { %576 = vmatprep.subr.bf16.mxu0 %v725_v0 }
  0x4e   :  { %577 = vmatpush3.bf16.msra.mxu0 %v625_v29 }
  0xf0   :  { %v137_v16 = vpop.f32.mrf.mxu0 }
  0xf1   :  { %v138_v17 = vadd.f32 %v488_v15, %v137_v16 }
  0xf2   :  { %v548_v18 = vpop.f32.mrf.mxu0 }
  0xf3   :  { %v144_v20 = vmul.f32 0.01, %v138_v17 }
  0xf4   :  { %v140_v19 = vpop.f32.mrf.mxu0 }
  0xf5   :  { %v141_v21 = vadd.f32 %v488_v15, %v140_v19  ;;  %v146_v24 = vmax.f32 %v138_v17, %v144_v20 }
  0xf6   :  { %v549_v22 = vpop.f32.mrf.mxu0 }
  0xf7   :  { %v145_v23 = vmul.f32 0.01, %v141_v21 }
  0xf9   :  { %v147_v25 = vmax.f32 %v141_v21, %v145_v23 }
  0xfb   :  { %v148_v26 = vpack.c.bf16 %v147_v25, %v146_v24 }
  0xfd   :  { %559 = vmatmul.mubr.msk.bf16.vlgmr.msra.gmra.mxu1 %vm188_vm2, %v148_v26 }
  0xfe   :  { %598 = vmatprep.mubr.msk.bf16.mxu1 %vm726_vm0, %v725_v0  ;;  %583 = vmatpush3.bf16.msra.mxu1 %v626_v30 }
  0xff   :  { %584 = vmatprep.subr.bf16.mxu1 %v725_v0 }
 0x102   :  { %585 = vmatpush3.bf16.msra.mxu1 %v627_v31 }
 0x103   :  { %586 = vmatprep.subr.bf16.mxu1 %v725_v0 }
 0x106   :  { %587 = vmatpush3.bf16.msra.mxu1 %v628_v32 }
 0x107   :  { %588 = vmatprep.subr.bf16.mxu1 %v725_v0 }
 0x10a   :  { %589 = vmatpush3.bf16.msra.mxu1 %v629_v33 }
 0x10b   :  { %590 = vmatprep.subr.bf16.mxu1 %v725_v0 }
 0x10e   :  { %591 = vmatpush3.bf16.msra.mxu1 %v630_v34 }
 0x10f   :  { %592 = vmatprep.subr.bf16.mxu1 %v725_v0 }
 0x112   :  { %593 = vmatpush3.bf16.msra.mxu1 %v631_v47 }
 0x113   :  { %594 = vmatprep.subr.bf16.mxu1 %v725_v0 }
 0x116   :  { %595 = vmatpush3.bf16.msra.mxu1 %v632_v48 }
 0x117   :  { %596 = vmatprep.subr.bf16.mxu1 %v725_v0 }
 0x11a   :  { %597 = vmatpush3.bf16.msra.mxu1 %v633_v49 }
 0x1bd   :  { %v226_v36 = vpop.f32.mrf.mxu1 }
 0x1be   :  { %v227_v37 = vadd.f32 %v492_v35, %v226_v36 }
 0x1bf   :  { %v560_v38 = vpop.f32.mrf.mxu1 }
 0x1c0   :  { %v233_v40 = vmul.f32 0.01, %v227_v37 }
 0x1c1   :  { %v229_v39 = vpop.f32.mrf.mxu1 }
 0x1c2   :  { %v230_v41 = vadd.f32 %v492_v35, %v229_v39  ;;  %v235_v44 = vmax.f32 %v227_v37, %v233_v40 }
 0x1c3   :  { %v561_v42 = vpop.f32.mrf.mxu1 }
 0x1c4   :  { %v234_v43 = vmul.f32 0.01, %v230_v41 }
 0x1c6   :  { %v236_v45 = vmax.f32 %v230_v41, %v234_v43 }
 0x1c8   :  { %v237_v46 = vpack.c.bf16 %v236_v45, %v235_v44 }
 0x1ca   :  { %579 = vmatmul.mubr.bf16.vlgmr.msra.gmra.mxu0 %v237_v46 }
 0x28a   :  { %v343_v51 = vpop.f32.mrf.mxu0 }
 0x28b   :  { %v344_v52 = vadd.f32 %v498_v50, %v343_v51 }
 0x28c   :  { %v580_v53 = vpop.f32.mrf.mxu0 }
 0x28d   :  { %v350_v55 = vmul.f32 0.01, %v344_v52 }
 0x28e   :  { %v346_v54 = vpop.f32.mrf.mxu0 }
 0x28f   :  { %v347_v56 = vadd.f32 %v498_v50, %v346_v54  ;;  %v352_v59 = vmax.f32 %v344_v52, %v350_v55 }
 0x290   :  { %v581_v57 = vpop.f32.mrf.mxu0 }
 0x291   :  { %v351_v58 = vmul.f32 0.01, %v347_v56 }
 0x293   :  { %v353_v60 = vmax.f32 %v347_v56, %v351_v58 }
 0x295   :  { %v354_v61 = vpack.c.bf16 %v353_v60, %v352_v59 }
 0x297   :  { %599 = vmatmul.mubr.bf16.vlgmr.msra.gmra.mxu1 %v354_v61 }
 0x357   :  { %v460_v63 = vpop.f32.mrf.mxu1 }
 0x358   :  { %v461_v0 = vadd.f32 %v507_v62, %v460_v63 }
 0x359   :  { %v600_v1 = vpop.f32.mrf.mxu1 }
 0x35a   :  { %468 = vst.msk [vmem:[#allocation8] sm:$0xff] %vm467_vm3, %v461_v0 }
 0x35b   :  { %v463_v2 = vpop.f32.mrf.mxu1 }
 0x35c   :  { %v464_v3 = vadd.f32 %v507_v62, %v463_v2 }
 0x35d   :  { %v601_v4 = vpop.f32.mrf.mxu1 }
 0x35e   :  { %469 = vst.msk [vmem:[#allocation8 + $0x8] sm:$0xff] %vm467_vm3, %v464_v3 }
 0x35f   :  { %705 = shalt.err (!%p702_p5)
}
 0x360   :  { %s728_s8 = smov 128   ;;  %s729_s18 = smov 8  }
 0x361   :  { %481 = dma.vmem_to_hbm [thread:$0]  %s476_s7, 256, %s894_s9, [#allocation4], %s728_s8, %s728_s8, %s729_s18  }
 0x362   :  { %718 = dma.done.wait [#allocation4], 256  }
 0x363   :  { %719 = vsyncadd [#allocation4], 4294967040 }
 0x364   :  { %485 = vsyncpa [#allocation3], 1 }
 0x365   :  { %486 = vsyncpa [#allocation6], 1 }
 0x366   :  { %487 = vsyncpa [#allocation4], 1 }

</bundles_post_ra>
